<compile_context>
chip_gen: v5e
topology: v5e:2x2
jax: 0.10.0
libtpu: 0.0.40
codegen_flags: <defaults>
</compile_context>

<pallas_src>
import functools

import jax
import jax.numpy as jnp
from jax.experimental import pallas as pl
from jax.experimental.pallas import tpu as pltpu


def _shc_kernel(s2sh_t_ref, x_ref, o_ref):
    # s2sh_t_ref: (C, V)              resident every grid step (tiny)
    # x_ref:      (tile_b, V, tile_s) lane-dense spatial tiles of the input
    # o_ref:      (tile_b, C, tile_s) lane-dense output tiles (full-width vst)
    tile_b = x_ref.shape[0]
    for b in range(tile_b):  # small static unroll; one MXU matmul per row
        o_ref[b] = jnp.dot(
            s2sh_t_ref[...], x_ref[b], preferred_element_type=jnp.float32
        ).astype(o_ref.dtype)


def _pick_tiles(BG, S, V, C, x_itemsize, o_itemsize, vmem_budget_bytes,
                max_batch_tile):
    """Pick (tile_b, tile_s, need_pad).

    tile_s is lane-dense (multiple of 128, or the full S).  tile_b > 1 only
    when a single spatial tile covers all of S (small volumes), to amortize
    per-grid-step overhead.
    """
    # Pipelined VMEM bytes per (batch row, spatial element): input row (V)
    # + output row (C), each double-buffered by the BlockSpec pipeline.
    per_elem = 2 * (V * x_itemsize + C * o_itemsize)
    max_tile_s = max(128, min(65536, (vmem_budget_bytes // per_elem) // 128 * 128))

    if S <= max_tile_s:
        tile_s = S  # single full-extent spatial tile, no padding needed
        max_tb = max(1, min(max_batch_tile,
                            vmem_budget_bytes // max(1, per_elem * tile_s)))
        tile_b = 1
        for t in range(1, max_tb + 1):  # largest divisor of BG within budget
            if BG % t == 0:
                tile_b = t
        return tile_b, tile_s, False

    # Spatial axis must be tiled: largest multiple-of-128 divisor of S that
    # fits the VMEM budget.
    best = 0
    t = 128
    while t <= max_tile_s:
        if S % t == 0:
            best = t
        t += 128
    if best:
        return 1, best, False
    return 1, max_tile_s, True  # ragged tail -> pad (rare fallback)


@functools.partial(
    jax.jit, static_argnames=("vmem_budget_bytes", "max_batch_tile")
)
def compute_shc(x, s2sh, *, vmem_budget_bytes=12 * 1024 * 1024,
                max_batch_tile=16):
    """Pallas implementation of ComputeSHC.forward.

    Args:
        x:    [B, in_ch, V, X, Y, Z] float array
        s2sh: [V, C] float array
    Returns:
        [B, in_ch, C, X, Y, Z] float array
    """
    B, in_ch, V, X, Y, Z = x.shape
    V2, C = s2sh.shape
    assert V == V2, "V mismatch between x and S2SH"

    out_dtype = jnp.result_type(x.dtype, s2sh.dtype)
    S = X * Y * Z
    BG = B * in_ch

    # Pure reshape of the native layout: no transpose, no extra HBM pass.
    x3d = x.reshape(BG, V, S)
    s2sh_t = s2sh.T.astype(out_dtype)  # [C, V], tiny

    tile_b, tile_s, need_pad = _pick_tiles(
        BG, S, V, C,
        jnp.dtype(x.dtype).itemsize, jnp.dtype(out_dtype).itemsize,
        vmem_budget_bytes, max_batch_tile,
    )

    S_pad = S
    if need_pad:
        # Fallback only when S is huge and has no multiple-of-128 divisor
        # within the VMEM budget.
        S_pad = pl.cdiv(S, tile_s) * tile_s
        x3d = jnp.pad(x3d, ((0, 0), (0, 0), (0, S_pad - S)))

    out3d = pl.pallas_call(
        _shc_kernel,
        out_shape=jax.ShapeDtypeStruct((BG, C, S_pad), out_dtype),
        grid=(BG // tile_b, S_pad // tile_s),
        in_specs=[
            # S2SH^T: same tiny block every step (no re-DMA since the block
            # index never changes).
            pl.BlockSpec((C, V), lambda b, s: (0, 0)),
            # x tile: batch rows grouped, spatial axis lane-dense.
            pl.BlockSpec((tile_b, V, tile_s), lambda b, s: (b, 0, s)),
        ],
        out_specs=pl.BlockSpec((tile_b, C, tile_s), lambda b, s: (b, 0, s)),
        compiler_params=pltpu.CompilerParams(
            dimension_semantics=("parallel", "parallel")
        ),
    )(s2sh_t, x3d)

    if need_pad:
        out3d = out3d[:, :, :S]
    return out3d.reshape(B, in_ch, C, X, Y, Z)


if __name__ == "__main__":
    key = jax.random.PRNGKey(0)
    kx, ks = jax.random.split(key)

    # Small, ComputeSHC-consistent shapes:
    #   B=2, in_ch=4, V=8 signal directions, C=16 SH coefficients, 4^3 voxels.
    B, in_ch, V, C = 2, 4, 8, 16
    X = Y = Z = 4

    x = jax.random.normal(kx, (B, in_ch, V, X, Y, Z), dtype=jnp.float32)
    # Deterministic synthetic S2SH buffer (stands in for the registered buffer).
    s2sh = jax.random.normal(ks, (V, C), dtype=jnp.float32)

    out = compute_shc(x, s2sh)
    out = jax.block_until_ready(out)

    # Reference check against plain-JAX einsum (same semantics as torch.einsum).
    ref = jnp.einsum("ijklmn,kp->ijplmn", x, s2sh)
    assert out.shape == (B, in_ch, C, X, Y, Z)
    assert jnp.allclose(out, ref, atol=1e-4, rtol=1e-4)

    print("KERNEL_OK")
</pallas_src>

<mosaic_0001>
module attributes {stable_mosaic.version = 11 : i64} {
  func.func @_shc_kernel(%arg0: i32, %arg1: i32, %arg2: memref<16x8xf32, #tpu.memory_space<vmem>>, %arg3: memref<8x8x64xf32, #tpu.memory_space<vmem>>, %arg4: memref<8x16x64xf32, #tpu.memory_space<vmem>>) attributes {dimension_semantics = [#tpu.dimension_semantics<parallel>, #tpu.dimension_semantics<parallel>], iteration_bounds = array<i64: 1, 1>, scalar_prefetch = 0 : i64, scratch_operands = 0 : i64, tpu.core_type = #tpu.core_type<tc>, window_params = [{pipeline_mode = #tpu.pipeline_mode<synchronous>, transform_indices = @transform_0, window_bounds = array<i64: 16, 8>}, {transform_indices = @transform_1, window_bounds = array<i64: 8, 8, 64>}, {transform_indices = @transform_2, window_bounds = array<i64: 8, 16, 64>}]} {
    %c0 = arith.constant 0 : index
    %c0_0 = arith.constant 0 : index
    %0 = vector.load %arg2[%c0, %c0_0] : memref<16x8xf32, #tpu.memory_space<vmem>>, vector<16x8xf32>
    %c0_1 = arith.constant 0 : index
    %c0_2 = arith.constant 0 : index
    %c0_3 = arith.constant 0 : index
    %1 = vector.load %arg3[%c0_1, %c0_2, %c0_3] : memref<8x8x64xf32, #tpu.memory_space<vmem>>, vector<1x8x64xf32>
    %2 = vector.shape_cast %1 : vector<1x8x64xf32> to vector<8x64xf32>
    %cst = arith.constant dense<0.000000e+00> : vector<16x64xf32>
    %3 = tpu.matmul %0, %2, %cst {dimension_numbers = #tpu.dot_dimension_numbers<[1], [0], [0], [1], [0, 0, 1, 1], [], []>} : vector<16x8xf32>, vector<8x64xf32>, vector<16x64xf32> -> vector<16x64xf32>
    %c0_4 = arith.constant 0 : index
    %c0_5 = arith.constant 0 : index
    %c0_6 = arith.constant 0 : index
    %4 = vector.load %arg4[%c0_4, %c0_5, %c0_6] : memref<8x16x64xf32, #tpu.memory_space<vmem>>, vector<1x16x64xf32>
    %5 = vector.shape_cast %4 : vector<1x16x64xf32> to vector<16x64xf32>
    %6 = vector.shape_cast %3 : vector<16x64xf32> to vector<1x16x64xf32>
    tpu.vector_store %arg4[%c0_4, %c0_5, %c0_6], %6 {strides = array<i32>} : memref<8x16x64xf32, #tpu.memory_space<vmem>>, vector<1x16x64xf32>,
    %c0_7 = arith.constant 0 : index
    %c0_8 = arith.constant 0 : index
    %7 = vector.load %arg2[%c0_7, %c0_8] : memref<16x8xf32, #tpu.memory_space<vmem>>, vector<16x8xf32>
    %c1 = arith.constant 1 : index
    %c0_9 = arith.constant 0 : index
    %c0_10 = arith.constant 0 : index
    %8 = vector.load %arg3[%c1, %c0_9, %c0_10] : memref<8x8x64xf32, #tpu.memory_space<vmem>>, vector<1x8x64xf32>
    %9 = vector.shape_cast %8 : vector<1x8x64xf32> to vector<8x64xf32>
    %cst_11 = arith.constant dense<0.000000e+00> : vector<16x64xf32>
    %10 = tpu.matmul %7, %9, %cst_11 {dimension_numbers = #tpu.dot_dimension_numbers<[1], [0], [0], [1], [0, 0, 1, 1], [], []>} : vector<16x8xf32>, vector<8x64xf32>, vector<16x64xf32> -> vector<16x64xf32>
    %c1_12 = arith.constant 1 : index
    %c0_13 = arith.constant 0 : index
    %c0_14 = arith.constant 0 : index
    %11 = vector.load %arg4[%c1_12, %c0_13, %c0_14] : memref<8x16x64xf32, #tpu.memory_space<vmem>>, vector<1x16x64xf32>
    %12 = vector.shape_cast %11 : vector<1x16x64xf32> to vector<16x64xf32>
    %13 = vector.shape_cast %10 : vector<16x64xf32> to vector<1x16x64xf32>
    tpu.vector_store %arg4[%c1_12, %c0_13, %c0_14], %13 {strides = array<i32>} : memref<8x16x64xf32, #tpu.memory_space<vmem>>, vector<1x16x64xf32>,
    %c0_15 = arith.constant 0 : index
    %c0_16 = arith.constant 0 : index
    %14 = vector.load %arg2[%c0_15, %c0_16] : memref<16x8xf32, #tpu.memory_space<vmem>>, vector<16x8xf32>
    %c2 = arith.constant 2 : index
    %c0_17 = arith.constant 0 : index
    %c0_18 = arith.constant 0 : index
    %15 = vector.load %arg3[%c2, %c0_17, %c0_18] : memref<8x8x64xf32, #tpu.memory_space<vmem>>, vector<1x8x64xf32>
    %16 = vector.shape_cast %15 : vector<1x8x64xf32> to vector<8x64xf32>
    %cst_19 = arith.constant dense<0.000000e+00> : vector<16x64xf32>
    %17 = tpu.matmul %14, %16, %cst_19 {dimension_numbers = #tpu.dot_dimension_numbers<[1], [0], [0], [1], [0, 0, 1, 1], [], []>} : vector<16x8xf32>, vector<8x64xf32>, vector<16x64xf32> -> vector<16x64xf32>
    %c2_20 = arith.constant 2 : index
    %c0_21 = arith.constant 0 : index
    %c0_22 = arith.constant 0 : index
    %18 = vector.load %arg4[%c2_20, %c0_21, %c0_22] : memref<8x16x64xf32, #tpu.memory_space<vmem>>, vector<1x16x64xf32>
    %19 = vector.shape_cast %18 : vector<1x16x64xf32> to vector<16x64xf32>
    %20 = vector.shape_cast %17 : vector<16x64xf32> to vector<1x16x64xf32>
    tpu.vector_store %arg4[%c2_20, %c0_21, %c0_22], %20 {strides = array<i32>} : memref<8x16x64xf32, #tpu.memory_space<vmem>>, vector<1x16x64xf32>,
    %c0_23 = arith.constant 0 : index
    %c0_24 = arith.constant 0 : index
    %21 = vector.load %arg2[%c0_23, %c0_24] : memref<16x8xf32, #tpu.memory_space<vmem>>, vector<16x8xf32>
    %c3 = arith.constant 3 : index
    %c0_25 = arith.constant 0 : index
    %c0_26 = arith.constant 0 : index
    %22 = vector.load %arg3[%c3, %c0_25, %c0_26] : memref<8x8x64xf32, #tpu.memory_space<vmem>>, vector<1x8x64xf32>
    %23 = vector.shape_cast %22 : vector<1x8x64xf32> to vector<8x64xf32>
    %cst_27 = arith.constant dense<0.000000e+00> : vector<16x64xf32>
    %24 = tpu.matmul %21, %23, %cst_27 {dimension_numbers = #tpu.dot_dimension_numbers<[1], [0], [0], [1], [0, 0, 1, 1], [], []>} : vector<16x8xf32>, vector<8x64xf32>, vector<16x64xf32> -> vector<16x64xf32>
    %c3_28 = arith.constant 3 : index
    %c0_29 = arith.constant 0 : index
    %c0_30 = arith.constant 0 : index
    %25 = vector.load %arg4[%c3_28, %c0_29, %c0_30] : memref<8x16x64xf32, #tpu.memory_space<vmem>>, vector<1x16x64xf32>
    %26 = vector.shape_cast %25 : vector<1x16x64xf32> to vector<16x64xf32>
    %27 = vector.shape_cast %24 : vector<16x64xf32> to vector<1x16x64xf32>
    tpu.vector_store %arg4[%c3_28, %c0_29, %c0_30], %27 {strides = array<i32>} : memref<8x16x64xf32, #tpu.memory_space<vmem>>, vector<1x16x64xf32>,
    %c0_31 = arith.constant 0 : index
    %c0_32 = arith.constant 0 : index
    %28 = vector.load %arg2[%c0_31, %c0_32] : memref<16x8xf32, #tpu.memory_space<vmem>>, vector<16x8xf32>
    %c4 = arith.constant 4 : index
    %c0_33 = arith.constant 0 : index
    %c0_34 = arith.constant 0 : index
    %29 = vector.load %arg3[%c4, %c0_33, %c0_34] : memref<8x8x64xf32, #tpu.memory_space<vmem>>, vector<1x8x64xf32>
    %30 = vector.shape_cast %29 : vector<1x8x64xf32> to vector<8x64xf32>
    %cst_35 = arith.constant dense<0.000000e+00> : vector<16x64xf32>
    %31 = tpu.matmul %28, %30, %cst_35 {dimension_numbers = #tpu.dot_dimension_numbers<[1], [0], [0], [1], [0, 0, 1, 1], [], []>} : vector<16x8xf32>, vector<8x64xf32>, vector<16x64xf32> -> vector<16x64xf32>
    %c4_36 = arith.constant 4 : index
    %c0_37 = arith.constant 0 : index
    %c0_38 = arith.constant 0 : index
    %32 = vector.load %arg4[%c4_36, %c0_37, %c0_38] : memref<8x16x64xf32, #tpu.memory_space<vmem>>, vector<1x16x64xf32>
    %33 = vector.shape_cast %32 : vector<1x16x64xf32> to vector<16x64xf32>
    %34 = vector.shape_cast %31 : vector<16x64xf32> to vector<1x16x64xf32>
    tpu.vector_store %arg4[%c4_36, %c0_37, %c0_38], %34 {strides = array<i32>} : memref<8x16x64xf32, #tpu.memory_space<vmem>>, vector<1x16x64xf32>,
    %c0_39 = arith.constant 0 : index
    %c0_40 = arith.constant 0 : index
    %35 = vector.load %arg2[%c0_39, %c0_40] : memref<16x8xf32, #tpu.memory_space<vmem>>, vector<16x8xf32>
    %c5 = arith.constant 5 : index
    %c0_41 = arith.constant 0 : index
    %c0_42 = arith.constant 0 : index
    %36 = vector.load %arg3[%c5, %c0_41, %c0_42] : memref<8x8x64xf32, #tpu.memory_space<vmem>>, vector<1x8x64xf32>
    %37 = vector.shape_cast %36 : vector<1x8x64xf32> to vector<8x64xf32>
    %cst_43 = arith.constant dense<0.000000e+00> : vector<16x64xf32>
    %38 = tpu.matmul %35, %37, %cst_43 {dimension_numbers = #tpu.dot_dimension_numbers<[1], [0], [0], [1], [0, 0, 1, 1], [], []>} : vector<16x8xf32>, vector<8x64xf32>, vector<16x64xf32> -> vector<16x64xf32>
    %c5_44 = arith.constant 5 : index
    %c0_45 = arith.constant 0 : index
    %c0_46 = arith.constant 0 : index
    %39 = vector.load %arg4[%c5_44, %c0_45, %c0_46] : memref<8x16x64xf32, #tpu.memory_space<vmem>>, vector<1x16x64xf32>
    %40 = vector.shape_cast %39 : vector<1x16x64xf32> to vector<16x64xf32>
    %41 = vector.shape_cast %38 : vector<16x64xf32> to vector<1x16x64xf32>
    tpu.vector_store %arg4[%c5_44, %c0_45, %c0_46], %41 {strides = array<i32>} : memref<8x16x64xf32, #tpu.memory_space<vmem>>, vector<1x16x64xf32>,
    %c0_47 = arith.constant 0 : index
    %c0_48 = arith.constant 0 : index
    %42 = vector.load %arg2[%c0_47, %c0_48] : memref<16x8xf32, #tpu.memory_space<vmem>>, vector<16x8xf32>
    %c6 = arith.constant 6 : index
    %c0_49 = arith.constant 0 : index
    %c0_50 = arith.constant 0 : index
    %43 = vector.load %arg3[%c6, %c0_49, %c0_50] : memref<8x8x64xf32, #tpu.memory_space<vmem>>, vector<1x8x64xf32>
    %44 = vector.shape_cast %43 : vector<1x8x64xf32> to vector<8x64xf32>
    %cst_51 = arith.constant dense<0.000000e+00> : vector<16x64xf32>
    %45 = tpu.matmul %42, %44, %cst_51 {dimension_numbers = #tpu.dot_dimension_numbers<[1], [0], [0], [1], [0, 0, 1, 1], [], []>} : vector<16x8xf32>, vector<8x64xf32>, vector<16x64xf32> -> vector<16x64xf32>
    %c6_52 = arith.constant 6 : index
    %c0_53 = arith.constant 0 : index
    %c0_54 = arith.constant 0 : index
    %46 = vector.load %arg4[%c6_52, %c0_53, %c0_54] : memref<8x16x64xf32, #tpu.memory_space<vmem>>, vector<1x16x64xf32>
    %47 = vector.shape_cast %46 : vector<1x16x64xf32> to vector<16x64xf32>
    %48 = vector.shape_cast %45 : vector<16x64xf32> to vector<1x16x64xf32>
    tpu.vector_store %arg4[%c6_52, %c0_53, %c0_54], %48 {strides = array<i32>} : memref<8x16x64xf32, #tpu.memory_space<vmem>>, vector<1x16x64xf32>,
    %c0_55 = arith.constant 0 : index
    %c0_56 = arith.constant 0 : index
    %49 = vector.load %arg2[%c0_55, %c0_56] : memref<16x8xf32, #tpu.memory_space<vmem>>, vector<16x8xf32>
    %c7 = arith.constant 7 : index
    %c0_57 = arith.constant 0 : index
    %c0_58 = arith.constant 0 : index
    %50 = vector.load %arg3[%c7, %c0_57, %c0_58] : memref<8x8x64xf32, #tpu.memory_space<vmem>>, vector<1x8x64xf32>
    %51 = vector.shape_cast %50 : vector<1x8x64xf32> to vector<8x64xf32>
    %cst_59 = arith.constant dense<0.000000e+00> : vector<16x64xf32>
    %52 = tpu.matmul %49, %51, %cst_59 {dimension_numbers = #tpu.dot_dimension_numbers<[1], [0], [0], [1], [0, 0, 1, 1], [], []>} : vector<16x8xf32>, vector<8x64xf32>, vector<16x64xf32> -> vector<16x64xf32>
    %c7_60 = arith.constant 7 : index
    %c0_61 = arith.constant 0 : index
    %c0_62 = arith.constant 0 : index
    %53 = vector.load %arg4[%c7_60, %c0_61, %c0_62] : memref<8x16x64xf32, #tpu.memory_space<vmem>>, vector<1x16x64xf32>
    %54 = vector.shape_cast %53 : vector<1x16x64xf32> to vector<16x64xf32>
    %55 = vector.shape_cast %52 : vector<16x64xf32> to vector<1x16x64xf32>
    tpu.vector_store %arg4[%c7_60, %c0_61, %c0_62], %55 {strides = array<i32>} : memref<8x16x64xf32, #tpu.memory_space<vmem>>, vector<1x16x64xf32>,
    return
  }
  func.func @transform_0(%arg0: i32, %arg1: i32) -> (i32, i32) {
    %c0_i32 = arith.constant 0 : i32
    %c0_i32_0 = arith.constant 0 : i32
    %c0_i32_1 = arith.constant 0 : i32
    return %c0_i32, %c0_i32_0 : i32, i32
  }
  func.func @transform_1(%arg0: i32, %arg1: i32) -> (i32, i32, i32) {
    %c0_i32 = arith.constant 0 : i32
    %c0_i32_0 = arith.constant 0 : i32
    return %arg0, %c0_i32, %arg1 : i32, i32, i32
  }
  func.func @transform_2(%arg0: i32, %arg1: i32) -> (i32, i32, i32) {
    %c0_i32 = arith.constant 0 : i32
    %c0_i32_0 = arith.constant 0 : i32
    return %arg0, %c0_i32, %arg1 : i32, i32, i32
  }
}

</mosaic_0001>

<bundles_post_ra>
// kernel: compute_shc.1
= control target key start
LH: loop header
LB: loop body
LE: loop exit
PB: predicated region body
PF: predicated region fallthrough
CT: control target
= control target key end

     0   :  { %vm14_vm0 = vcmask 64512   ;;  %vm44_vm1 = vcmask 523264   ;;  %s465_s1 = inlined_call_operand.vmem [shape: f32[8,8,64], index: 1, kind: input, shape index: {}]   ;;  %s466_s0 = inlined_call_operand.vmem [shape: f32[16,8], index: 0, kind: input, shape index: {}]   ;;  %s467_s2 = inlined_call_operand.vmem [shape: f32[8,16,64], index: 2, kind: output, shape index: {}]  }
   0x1   :  { %v310_v0 = vld [vmem:[%s465_s1 + $0x10] sm:$0xff]  ;;  %v315_v1 = vld [vmem:[%s465_s1 + $0x18] sm:$0xff]  ;;  %v83_v2 = vld [vmem:[%s466_s0] sm:$0xff] }
   0x2   :  { %108 = vmatpush.msra.mxu2 %v310_v0  ;;  %144 = vmatpush.msra.mxu3 %v315_v1  ;;  %v330_v3 = vld [vmem:[%s465_s1 + $0x30] sm:$0xff]  ;;  %v335_v4 = vld [vmem:[%s465_s1 + $0x38] sm:$0xff]  ;;  %v13_v5 = vld [vmem:[%s465_s1] sm:$0xff] }
   0x3   :  { %311 = vmatmul.msk.f32.vlgmr.msra.gmra.mxu2 %vm14_vm0, %v83_v2  ;;  %316 = vmatmul.msk.f32.vlgmr.msra.gmra.mxu3 %vm14_vm0, %v83_v2  ;;  %v305_v6 = vld [vmem:[%s465_s1 + $0x8] sm:$0xff]  ;;  %v320_v7 = vld [vmem:[%s465_s1 + $0x20] sm:$0xff] }
   0x4   :  { %252 = vmatpush.msrb.mxu2 %v330_v3  ;;  %288 = vmatpush.msrb.mxu3 %v335_v4  ;;  %v325_v8 = vld [vmem:[%s465_s1 + $0x28] sm:$0xff] }
   0x5   :  { %36 = vmatpush.msra.mxu0 %v13_v5  ;;  %72 = vmatpush.msra.mxu1 %v305_v6  ;;  %v84_v9 = vld [vmem:[%s466_s0 + $0x8] sm:$0xff] }
   0x6   :  { %303 = vmatmul.msk.f32.vlgmr.msra.gmra.mxu0 %vm14_vm0, %v83_v2  ;;  %306 = vmatmul.msk.f32.vlgmr.msra.gmra.mxu1 %vm14_vm0, %v83_v2 }
   0x7   :  { %180 = vmatpush.msrb.mxu0 %v320_v7  ;;  %216 = vmatpush.msrb.mxu1 %v325_v8 }
   0xb   :  { %312 = vmatmul.msk.f32.gmra.mxu2 %vm14_vm0, %v84_v9  ;;  %317 = vmatmul.msk.f32.gmra.mxu3 %vm14_vm0, %v84_v9 }
   0xe   :  { %304 = vmatmul.msk.f32.gmra.mxu0 %vm14_vm0, %v84_v9  ;;  %307 = vmatmul.msk.f32.gmra.mxu1 %vm14_vm0, %v84_v9 }
  0x13   :  { %331 = vmatmul.msk.f32.vlgmr.msrb.gmra.mxu2 %vm14_vm0, %v83_v2  ;;  %336 = vmatmul.msk.f32.vlgmr.msrb.gmra.mxu3 %vm14_vm0, %v83_v2 }
  0x16   :  { %321 = vmatmul.msk.f32.vlgmr.msrb.gmra.mxu0 %vm14_vm0, %v83_v2  ;;  %326 = vmatmul.msk.f32.vlgmr.msrb.gmra.mxu1 %vm14_vm0, %v83_v2 }
  0x1b   :  { %332 = vmatmul.msk.f32.gmra.mxu2 %vm14_vm0, %v84_v9  ;;  %337 = vmatmul.msk.f32.gmra.mxu3 %vm14_vm0, %v84_v9 }
  0x1e   :  { %322 = vmatmul.msk.f32.gmra.mxu0 %vm14_vm0, %v84_v9  ;;  %327 = vmatmul.msk.f32.gmra.mxu1 %vm14_vm0, %v84_v9 }
  0x83   :  { %v38_v10 = vpop.f32.mrf.mxu0  ;;  %v74_v11 = vpop.f32.mrf.mxu1 }
  0x84   :  { %45 = vst.msk [vmem:[%s467_s2] sm:$0xff] %vm44_vm1, %v38_v10 }
  0x85   :  { %308 = vst.msk [vmem:[%s467_s2 + $0x10] sm:$0xff] %vm44_vm1, %v74_v11 }
  0x86   :  { %v110_v12 = vpop.f32.mrf.mxu2  ;;  %v146_v13 = vpop.f32.mrf.mxu3 }
  0x87   :  { %313 = vst.msk [vmem:[%s467_s2 + $0x20] sm:$0xff] %vm44_vm1, %v110_v12 }
  0x88   :  { %318 = vst.msk [vmem:[%s467_s2 + $0x30] sm:$0xff] %vm44_vm1, %v146_v13 }
  0x8b   :  { %v41_v14 = vpop.f32.mrf.mxu0  ;;  %v77_v15 = vpop.f32.mrf.mxu1 }
  0x8c   :  { %46 = vst.msk [vmem:[%s467_s2 + $0x8] sm:$0xff] %vm44_vm1, %v41_v14 }
  0x8d   :  { %309 = vst.msk [vmem:[%s467_s2 + $0x18] sm:$0xff] %vm44_vm1, %v77_v15 }
  0x8e   :  { %v113_v16 = vpop.f32.mrf.mxu2  ;;  %v149_v17 = vpop.f32.mrf.mxu3 }
  0x8f   :  { %314 = vst.msk [vmem:[%s467_s2 + $0x28] sm:$0xff] %vm44_vm1, %v113_v16 }
  0x90   :  { %319 = vst.msk [vmem:[%s467_s2 + $0x38] sm:$0xff] %vm44_vm1, %v149_v17 }
  0x93   :  { %v182_v18 = vpop.f32.mrf.mxu0  ;;  %v218_v19 = vpop.f32.mrf.mxu1 }
  0x94   :  { %323 = vst.msk [vmem:[%s467_s2 + $0x40] sm:$0xff] %vm44_vm1, %v182_v18 }
  0x95   :  { %328 = vst.msk [vmem:[%s467_s2 + $0x50] sm:$0xff] %vm44_vm1, %v218_v19 }
  0x96   :  { %v254_v20 = vpop.f32.mrf.mxu2  ;;  %v290_v21 = vpop.f32.mrf.mxu3 }
  0x97   :  { %333 = vst.msk [vmem:[%s467_s2 + $0x60] sm:$0xff] %vm44_vm1, %v254_v20 }
  0x98   :  { %338 = vst.msk [vmem:[%s467_s2 + $0x70] sm:$0xff] %vm44_vm1, %v290_v21 }
  0x9b   :  { %v185_v22 = vpop.f32.mrf.mxu0  ;;  %v221_v23 = vpop.f32.mrf.mxu1 }
  0x9c   :  { %324 = vst.msk [vmem:[%s467_s2 + $0x48] sm:$0xff] %vm44_vm1, %v185_v22 }
  0x9d   :  { %329 = vst.msk [vmem:[%s467_s2 + $0x58] sm:$0xff] %vm44_vm1, %v221_v23 }
  0x9e   :  { %v257_v24 = vpop.f32.mrf.mxu2  ;;  %v293_v25 = vpop.f32.mrf.mxu3 }
  0x9f   :  { %334 = vst.msk [vmem:[%s467_s2 + $0x68] sm:$0xff] %vm44_vm1, %v257_v24 }
  0xa0   :  { %339 = vst.msk [vmem:[%s467_s2 + $0x78] sm:$0xff] %vm44_vm1, %v293_v25 }

</bundles_post_ra>
